<compile_context>
chip_gen: v7x
topology: tpu7x:2x2x1
jax: 0.10.0
libtpu: 0.0.40
codegen_flags: <defaults>
</compile_context>

<pallas_src>
import jax
import jax.numpy as jnp
from jax.experimental import pallas as pl
from jax.experimental.pallas import tpu as pltpu

TXT_IN = 3        # fc_txt.in_features (bert logits)
TXT_PAD = 128     # text input padded to one full lane group
IMG_IN = 1000     # fc_img.in_features (resnet output)
IMG_PAD = 1024    # IMG_IN rounded up to a multiple of 128
LBL_PAD = 128     # lane-dense output width (num_labels padded)


def _head_kernel(txt_ref, img_ref, wtxt_ref, btxt_ref, wimg_ref, bimg_ref,
                 w1_ref, b1_ref, w2_ref, b2_ref, out_ref, c_ref):
    j = pl.program_id(0)
    h2 = wtxt_ref.shape[1]          # static Python int (hidden_dim // 2)

    @pl.when(j == 0)
    def _():
        # fc_txt (padded to 128 lanes) and fc_img on the MXU: bf16 inputs,
        # f32 accumulation.
        t = jnp.dot(txt_ref[...], wtxt_ref[...],
                    preferred_element_type=jnp.float32) + btxt_ref[...]
        im = jnp.dot(img_ref[...], wimg_ref[...],
                     preferred_element_type=jnp.float32) + bimg_ref[...]
        # ReLU + materialize concat([t, i], dim=1) once in VMEM scratch.
        c_ref[:, :h2] = jnp.maximum(t, 0.0).astype(c_ref.dtype)
        c_ref[:, h2:] = jnp.maximum(im, 0.0).astype(c_ref.dtype)
        # Initialize the resident output accumulator with the fc2 bias.
        out_ref[...] = jnp.broadcast_to(b2_ref[...], out_ref.shape)

    # fc1 for this column tile + ReLU, then accumulate its fc2 contribution.
    h = jnp.dot(c_ref[...], w1_ref[...],
                preferred_element_type=jnp.float32) + b1_ref[...]
    h = jnp.maximum(h, 0.0)
    out_ref[...] += jnp.dot(h.astype(jnp.bfloat16), w2_ref[...],
                            preferred_element_type=jnp.float32)


def _round_up(x, m):
    return (x + m - 1) // m * m


def prepare_params(raw_params):
    """One-time conversion: bf16 weights + padded text/image/label dims.

    raw_params are f32 with (in_features, out_features) layout (transposed
    PyTorch Linear weights).
    """
    (w_txt, b_txt, w_img, b_img, w1, b1, w2, b2) = raw_params
    H = w1.shape[0]
    H2 = H // 2
    L = w2.shape[1]
    assert H % 256 == 0, "hidden_dim must be a multiple of 256"
    assert w_txt.shape == (TXT_IN, H2) and w_img.shape == (IMG_IN, H2)
    assert L <= LBL_PAD

    w_txt_p = jnp.zeros((TXT_PAD, H2), jnp.bfloat16).at[:TXT_IN].set(
        w_txt.astype(jnp.bfloat16))
    w_img_p = jnp.zeros((IMG_PAD, H2), jnp.bfloat16).at[:IMG_IN].set(
        w_img.astype(jnp.bfloat16))
    w2_p = jnp.zeros((H, LBL_PAD), jnp.bfloat16).at[:, :L].set(
        w2.astype(jnp.bfloat16))
    b2_p = jnp.zeros((1, LBL_PAD), jnp.float32).at[:, :L].set(
        b2.astype(jnp.float32).reshape(1, L))

    return dict(
        w_txt=w_txt_p,
        b_txt=b_txt.astype(jnp.float32).reshape(1, H2),
        w_img=w_img_p,
        b_img=b_img.astype(jnp.float32).reshape(1, H2),
        w1=w1.astype(jnp.bfloat16),
        b1=b1.astype(jnp.float32).reshape(1, H),
        w2=w2_p,
        b2=b2_p,
        hidden_dim=H,
        num_labels=L,
    )


def multimodal_head(text_embeddings, image_embeddings, prepared, *, tile_n=512):
    """text_embeddings: (B, 3), image_embeddings: (B, 1000) -> (B, num_labels)."""
    H = prepared["hidden_dim"]
    L = prepared["num_labels"]
    H2 = H // 2
    tn = min(tile_n, H)
    assert H % tn == 0 and tn % 128 == 0

    B = text_embeddings.shape[0]
    Bp = _round_up(B, 8)

    txt = jnp.zeros((Bp, TXT_PAD), jnp.bfloat16).at[:B, :TXT_IN].set(
        text_embeddings.astype(jnp.bfloat16))
    img = jnp.zeros((Bp, IMG_PAD), jnp.bfloat16).at[:B, :IMG_IN].set(
        image_embeddings.astype(jnp.bfloat16))

    args = (txt, img,
            prepared["w_txt"], prepared["b_txt"],
            prepared["w_img"], prepared["b_img"],
            prepared["w1"], prepared["b1"],
            prepared["w2"], prepared["b2"])

    in_specs = [
        pl.BlockSpec((Bp, TXT_PAD), lambda j: (0, 0)),       # txt (resident)
        pl.BlockSpec((Bp, IMG_PAD), lambda j: (0, 0)),       # img (resident)
        pl.BlockSpec((TXT_PAD, H2), lambda j: (0, 0)),       # w_txt
        pl.BlockSpec((1, H2), lambda j: (0, 0)),             # b_txt
        pl.BlockSpec((IMG_PAD, H2), lambda j: (0, 0)),       # w_img
        pl.BlockSpec((1, H2), lambda j: (0, 0)),             # b_img
        pl.BlockSpec((H, tn), lambda j: (0, j)),             # w1 column tile
        pl.BlockSpec((1, tn), lambda j: (0, j)),             # b1 tile
        pl.BlockSpec((tn, LBL_PAD), lambda j: (j, 0)),       # w2 row tile
        pl.BlockSpec((1, LBL_PAD), lambda j: (0, 0)),        # b2
    ]

    out = pl.pallas_call(
        _head_kernel,
        out_shape=jax.ShapeDtypeStruct((Bp, LBL_PAD), jnp.float32),
        grid=(H // tn,),
        in_specs=in_specs,
        out_specs=pl.BlockSpec((Bp, LBL_PAD), lambda j: (0, 0)),
        scratch_shapes=[pltpu.VMEM((Bp, H), jnp.bfloat16)],
        compiler_params=pltpu.CompilerParams(
            dimension_semantics=("arbitrary",),     # reduction over w1 tiles
            vmem_limit_bytes=32 * 1024 * 1024),
    )(*args)
    return out[:B, :L]


def init_params(key, hidden_dim, num_labels):
    """Raw f32 params with PyTorch Linear shapes (stored transposed)."""
    ks = jax.random.split(key, 8)
    H = hidden_dim
    H2 = H // 2
    s = 0.02
    w_txt = s * jax.random.normal(ks[0], (TXT_IN, H2), jnp.float32)
    b_txt = s * jax.random.normal(ks[1], (H2,), jnp.float32)
    w_img = s * jax.random.normal(ks[2], (IMG_IN, H2), jnp.float32)
    b_img = s * jax.random.normal(ks[3], (H2,), jnp.float32)
    w1 = s * jax.random.normal(ks[4], (H, H), jnp.float32)
    b1 = s * jax.random.normal(ks[5], (H,), jnp.float32)
    w2 = s * jax.random.normal(ks[6], (H, num_labels), jnp.float32)
    b2 = s * jax.random.normal(ks[7], (num_labels,), jnp.float32)
    return (w_txt, b_txt, w_img, b_img, w1, b1, w2, b2)


def reference_head(text_embeddings, image_embeddings, raw_params):
    """Pure-JAX reference matching the PyTorch forward (after the backbones),
    with the same bf16-weight / f32-accumulate numerics as the kernel."""
    (w_txt, b_txt, w_img, b_img, w1, b1, w2, b2) = raw_params
    f32 = jnp.float32
    bf = lambda x: x.astype(jnp.bfloat16)
    t = jnp.maximum(
        jnp.dot(bf(text_embeddings), bf(w_txt),
                preferred_element_type=f32) + b_txt, 0.0)
    i = jnp.maximum(
        jnp.dot(bf(image_embeddings), bf(w_img),
                preferred_element_type=f32) + b_img, 0.0)
    c = jnp.concatenate((t, i), axis=1)
    h = jnp.maximum(
        jnp.dot(bf(c), bf(w1), preferred_element_type=f32) + b1, 0.0)
    return jnp.dot(bf(h), bf(w2), preferred_element_type=f32) + b2


if __name__ == "__main__":
    key = jax.random.PRNGKey(0)
    k_params, k_txt, k_img = jax.random.split(key, 3)

    batch = 4          # exercises batch padding (padded to 8 in the wrapper)
    hidden_dim = 256   # small stand-in for the default 2048
    num_labels = 4

    raw_params = init_params(k_params, hidden_dim, num_labels)
    prepared = prepare_params(raw_params)

    # Stand-ins for bert_model(texts).logits and resnet_model(images):
    text_embeddings = jax.random.normal(k_txt, (batch, TXT_IN), jnp.float32)
    image_embeddings = jax.random.normal(k_img, (batch, IMG_IN), jnp.float32)

    # tile_n=128 -> 2-step grid at this hidden_dim, exercising accumulation.
    logits = multimodal_head(text_embeddings, image_embeddings, prepared,
                             tile_n=128)
    logits = jax.block_until_ready(logits)

    ref = reference_head(text_embeddings, image_embeddings, raw_params)
    assert logits.shape == (batch, num_labels)
    assert jnp.allclose(logits, ref, atol=1e-2, rtol=1e-2), "mismatch vs reference"

    print("KERNEL_OK")
</pallas_src>

<mosaic_0001>
module attributes {stable_mosaic.version = 11 : i64} {
  func.func @_head_kernel(%arg0: i32, %arg1: memref<8x128xbf16, #tpu.memory_space<vmem>>, %arg2: memref<8x1024xbf16, #tpu.memory_space<vmem>>, %arg3: memref<128x128xbf16, #tpu.memory_space<vmem>>, %arg4: memref<1x128xf32, #tpu.memory_space<vmem>>, %arg5: memref<1024x128xbf16, #tpu.memory_space<vmem>>, %arg6: memref<1x128xf32, #tpu.memory_space<vmem>>, %arg7: memref<256x128xbf16, #tpu.memory_space<vmem>>, %arg8: memref<1x128xf32, #tpu.memory_space<vmem>>, %arg9: memref<128x128xbf16, #tpu.memory_space<vmem>>, %arg10: memref<1x128xf32, #tpu.memory_space<vmem>>, %arg11: memref<8x128xf32, #tpu.memory_space<vmem>>, %arg12: memref<8x256xbf16, #tpu.memory_space<vmem>>) attributes {dimension_semantics = [#tpu.dimension_semantics<arbitrary>], iteration_bounds = array<i64: 2>, scalar_prefetch = 0 : i64, scratch_operands = 1 : i64, tpu.core_type = #tpu.core_type<tc>, window_params = [{pipeline_mode = #tpu.pipeline_mode<synchronous>, transform_indices = @transform_0, window_bounds = array<i64: 8, 128>}, {pipeline_mode = #tpu.pipeline_mode<synchronous>, transform_indices = @transform_1, window_bounds = array<i64: 8, 1024>}, {pipeline_mode = #tpu.pipeline_mode<synchronous>, transform_indices = @transform_2, window_bounds = array<i64: 128, 128>}, {pipeline_mode = #tpu.pipeline_mode<synchronous>, transform_indices = @transform_3, window_bounds = array<i64: 1, 128>}, {pipeline_mode = #tpu.pipeline_mode<synchronous>, transform_indices = @transform_4, window_bounds = array<i64: 1024, 128>}, {pipeline_mode = #tpu.pipeline_mode<synchronous>, transform_indices = @transform_5, window_bounds = array<i64: 1, 128>}, {transform_indices = @transform_6, window_bounds = array<i64: 256, 128>}, {transform_indices = @transform_7, window_bounds = array<i64: 1, 128>}, {transform_indices = @transform_8, window_bounds = array<i64: 128, 128>}, {pipeline_mode = #tpu.pipeline_mode<synchronous>, transform_indices = @transform_9, window_bounds = array<i64: 1, 128>}, {pipeline_mode = #tpu.pipeline_mode<synchronous>, transform_indices = @transform_10, window_bounds = array<i64: 8, 128>}]} {
    %c0_i32 = arith.constant 0 : i32
    %0 = arith.cmpi eq, %arg0, %c0_i32 : i32
    %1 = arith.extui %0 : i1 to i32
    %c0_i32_0 = arith.constant 0 : i32
    %2 = arith.cmpi ne, %1, %c0_i32_0 : i32
    scf.if %2 {
      %c0_14 = arith.constant 0 : index
      %c0_15 = arith.constant 0 : index
      %17 = vector.load %arg1[%c0_14, %c0_15] : memref<8x128xbf16, #tpu.memory_space<vmem>>, vector<8x128xbf16>
      %c0_16 = arith.constant 0 : index
      %c0_17 = arith.constant 0 : index
      %18 = vector.load %arg3[%c0_16, %c0_17] : memref<128x128xbf16, #tpu.memory_space<vmem>>, vector<128x128xbf16>
      %cst_18 = arith.constant dense<0.000000e+00> : vector<8x128xf32>
      %19 = tpu.matmul %17, %18, %cst_18 {dimension_numbers = #tpu.dot_dimension_numbers<[1], [0], [0], [1], [0, 0, 1, 1], [], []>} : vector<8x128xbf16>, vector<128x128xbf16>, vector<8x128xf32> -> vector<8x128xf32>
      %c0_19 = arith.constant 0 : index
      %c0_20 = arith.constant 0 : index
      %20 = vector.load %arg4[%c0_19, %c0_20] : memref<1x128xf32, #tpu.memory_space<vmem>>, vector<1x128xf32>
      %21 = vector.broadcast %20 : vector<1x128xf32> to vector<8x128xf32>
      %22 = arith.addf %19, %21 : vector<8x128xf32>
      %c0_21 = arith.constant 0 : index
      %c0_22 = arith.constant 0 : index
      %23 = vector.load %arg2[%c0_21, %c0_22] : memref<8x1024xbf16, #tpu.memory_space<vmem>>, vector<8x1024xbf16>
      %c0_23 = arith.constant 0 : index
      %c0_24 = arith.constant 0 : index
      %24 = vector.load %arg5[%c0_23, %c0_24] : memref<1024x128xbf16, #tpu.memory_space<vmem>>, vector<1024x128xbf16>
      %cst_25 = arith.constant dense<0.000000e+00> : vector<8x128xf32>
      %25 = tpu.matmul %23, %24, %cst_25 {dimension_numbers = #tpu.dot_dimension_numbers<[1], [0], [0], [1], [0, 0, 1, 1], [], []>} : vector<8x1024xbf16>, vector<1024x128xbf16>, vector<8x128xf32> -> vector<8x128xf32>
      %c0_26 = arith.constant 0 : index
      %c0_27 = arith.constant 0 : index
      %26 = vector.load %arg6[%c0_26, %c0_27] : memref<1x128xf32, #tpu.memory_space<vmem>>, vector<1x128xf32>
      %27 = vector.broadcast %26 : vector<1x128xf32> to vector<8x128xf32>
      %28 = arith.addf %25, %27 : vector<8x128xf32>
      %cst_28 = arith.constant 0.000000e+00 : f32
      %29 = vector.broadcast %cst_28 : f32 to vector<8x128xf32>
      %30 = arith.maximumf %22, %29 : vector<8x128xf32>
      %31 = arith.truncf %30 : vector<8x128xf32> to vector<8x128xbf16>
      %c0_29 = arith.constant 0 : index
      %c0_30 = arith.constant 0 : index
      %32 = vector.load %arg12[%c0_29, %c0_30] : memref<8x256xbf16, #tpu.memory_space<vmem>>, vector<8x128xbf16>
      tpu.vector_store %arg12[%c0_29, %c0_30], %31 {strides = array<i32>} : memref<8x256xbf16, #tpu.memory_space<vmem>>, vector<8x128xbf16>,
      %cst_31 = arith.constant 0.000000e+00 : f32
      %33 = vector.broadcast %cst_31 : f32 to vector<8x128xf32>
      %34 = arith.maximumf %28, %33 : vector<8x128xf32>
      %35 = arith.truncf %34 : vector<8x128xf32> to vector<8x128xbf16>
      %c0_32 = arith.constant 0 : index
      %c128 = arith.constant 128 : index
      %36 = vector.load %arg12[%c0_32, %c128] : memref<8x256xbf16, #tpu.memory_space<vmem>>, vector<8x128xbf16>
      tpu.vector_store %arg12[%c0_32, %c128], %35 {strides = array<i32>} : memref<8x256xbf16, #tpu.memory_space<vmem>>, vector<8x128xbf16>,
      %c0_33 = arith.constant 0 : index
      %c0_34 = arith.constant 0 : index
      %37 = vector.load %arg10[%c0_33, %c0_34] : memref<1x128xf32, #tpu.memory_space<vmem>>, vector<1x128xf32>
      %38 = vector.shape_cast %37 : vector<1x128xf32> to vector<1x128xf32>
      %39 = vector.broadcast %38 : vector<1x128xf32> to vector<8x128xf32>
      %c0_35 = arith.constant 0 : index
      %c0_36 = arith.constant 0 : index
      %40 = vector.load %arg11[%c0_35, %c0_36] : memref<8x128xf32, #tpu.memory_space<vmem>>, vector<8x128xf32>
      tpu.vector_store %arg11[%c0_35, %c0_36], %39 {strides = array<i32>} : memref<8x128xf32, #tpu.memory_space<vmem>>, vector<8x128xf32>,
    } else {
    }
    %c0 = arith.constant 0 : index
    %c0_1 = arith.constant 0 : index
    %3 = vector.load %arg12[%c0, %c0_1] : memref<8x256xbf16, #tpu.memory_space<vmem>>, vector<8x256xbf16>
    %c0_2 = arith.constant 0 : index
    %c0_3 = arith.constant 0 : index
    %4 = vector.load %arg7[%c0_2, %c0_3] : memref<256x128xbf16, #tpu.memory_space<vmem>>, vector<256x128xbf16>
    %cst = arith.constant dense<0.000000e+00> : vector<8x128xf32>
    %5 = tpu.matmul %3, %4, %cst {dimension_numbers = #tpu.dot_dimension_numbers<[1], [0], [0], [1], [0, 0, 1, 1], [], []>} : vector<8x256xbf16>, vector<256x128xbf16>, vector<8x128xf32> -> vector<8x128xf32>
    %c0_4 = arith.constant 0 : index
    %c0_5 = arith.constant 0 : index
    %6 = vector.load %arg8[%c0_4, %c0_5] : memref<1x128xf32, #tpu.memory_space<vmem>>, vector<1x128xf32>
    %7 = vector.broadcast %6 : vector<1x128xf32> to vector<8x128xf32>
    %8 = arith.addf %5, %7 : vector<8x128xf32>
    %cst_6 = arith.constant 0.000000e+00 : f32
    %9 = vector.broadcast %cst_6 : f32 to vector<8x128xf32>
    %10 = arith.maximumf %8, %9 : vector<8x128xf32>
    %c0_7 = arith.constant 0 : index
    %c0_8 = arith.constant 0 : index
    %11 = vector.load %arg11[%c0_7, %c0_8] : memref<8x128xf32, #tpu.memory_space<vmem>>, vector<8x128xf32>
    %12 = arith.truncf %10 : vector<8x128xf32> to vector<8x128xbf16>
    %c0_9 = arith.constant 0 : index
    %c0_10 = arith.constant 0 : index
    %13 = vector.load %arg9[%c0_9, %c0_10] : memref<128x128xbf16, #tpu.memory_space<vmem>>, vector<128x128xbf16>
    %cst_11 = arith.constant dense<0.000000e+00> : vector<8x128xf32>
    %14 = tpu.matmul %12, %13, %cst_11 {dimension_numbers = #tpu.dot_dimension_numbers<[1], [0], [0], [1], [0, 0, 1, 1], [], []>} : vector<8x128xbf16>, vector<128x128xbf16>, vector<8x128xf32> -> vector<8x128xf32>
    %15 = arith.addf %11, %14 : vector<8x128xf32>
    %c0_12 = arith.constant 0 : index
    %c0_13 = arith.constant 0 : index
    %16 = vector.load %arg11[%c0_12, %c0_13] : memref<8x128xf32, #tpu.memory_space<vmem>>, vector<8x128xf32>
    tpu.vector_store %arg11[%c0_12, %c0_13], %15 {strides = array<i32>} : memref<8x128xf32, #tpu.memory_space<vmem>>, vector<8x128xf32>,
    return
  }
  func.func @transform_0(%arg0: i32) -> (i32, i32) {
    %c0_i32 = arith.constant 0 : i32
    %c0_i32_0 = arith.constant 0 : i32
    %c0_i32_1 = arith.constant 0 : i32
    return %c0_i32, %c0_i32_0 : i32, i32
  }
  func.func @transform_1(%arg0: i32) -> (i32, i32) {
    %c0_i32 = arith.constant 0 : i32
    %c0_i32_0 = arith.constant 0 : i32
    %c0_i32_1 = arith.constant 0 : i32
    return %c0_i32, %c0_i32_0 : i32, i32
  }
  func.func @transform_2(%arg0: i32) -> (i32, i32) {
    %c0_i32 = arith.constant 0 : i32
    %c0_i32_0 = arith.constant 0 : i32
    %c0_i32_1 = arith.constant 0 : i32
    return %c0_i32, %c0_i32_0 : i32, i32
  }
  func.func @transform_3(%arg0: i32) -> (i32, i32) {
    %c0_i32 = arith.constant 0 : i32
    %c0_i32_0 = arith.constant 0 : i32
    %c0_i32_1 = arith.constant 0 : i32
    return %c0_i32, %c0_i32_0 : i32, i32
  }
  func.func @transform_4(%arg0: i32) -> (i32, i32) {
    %c0_i32 = arith.constant 0 : i32
    %c0_i32_0 = arith.constant 0 : i32
    %c0_i32_1 = arith.constant 0 : i32
    return %c0_i32, %c0_i32_0 : i32, i32
  }
  func.func @transform_5(%arg0: i32) -> (i32, i32) {
    %c0_i32 = arith.constant 0 : i32
    %c0_i32_0 = arith.constant 0 : i32
    %c0_i32_1 = arith.constant 0 : i32
    return %c0_i32, %c0_i32_0 : i32, i32
  }
  func.func @transform_6(%arg0: i32) -> (i32, i32) {
    %c0_i32 = arith.constant 0 : i32
    %c0_i32_0 = arith.constant 0 : i32
    return %c0_i32, %arg0 : i32, i32
  }
  func.func @transform_7(%arg0: i32) -> (i32, i32) {
    %c0_i32 = arith.constant 0 : i32
    %c0_i32_0 = arith.constant 0 : i32
    return %c0_i32, %arg0 : i32, i32
  }
  func.func @transform_8(%arg0: i32) -> (i32, i32) {
    %c0_i32 = arith.constant 0 : i32
    %c0_i32_0 = arith.constant 0 : i32
    return %arg0, %c0_i32 : i32, i32
  }
  func.func @transform_9(%arg0: i32) -> (i32, i32) {
    %c0_i32 = arith.constant 0 : i32
    %c0_i32_0 = arith.constant 0 : i32
    %c0_i32_1 = arith.constant 0 : i32
    return %c0_i32, %c0_i32_0 : i32, i32
  }
  func.func @transform_10(%arg0: i32) -> (i32, i32) {
    %c0_i32 = arith.constant 0 : i32
    %c0_i32_0 = arith.constant 0 : i32
    %c0_i32_1 = arith.constant 0 : i32
    return %c0_i32, %c0_i32_0 : i32, i32
  }
}

</mosaic_0001>

<bundles_post_ra>
// kernel: tpu_custom_call.1
= control target key start
LH: loop header
LB: loop body
LE: loop exit
PB: predicated region body
PF: predicated region fallthrough
CT: control target
= control target key end

     0   :  { %s2911_s0 = inlined_call_operand.hbm [shape: bf16[8,128], index: 0, kind: input, shape index: {}]   ;;  %s2912_s1 = inlined_call_operand.hbm [shape: bf16[8,1024], index: 1, kind: input, shape index: {}]   ;;  %s2913_s2 = inlined_call_operand.hbm [shape: bf16[128,128], index: 2, kind: input, shape index: {}]   ;;  %s2914_s3 = inlined_call_operand.vmem [shape: f32[1,128], index: 3, kind: input, shape index: {}]   ;;  %s2915_s4 = inlined_call_operand.hbm [shape: bf16[1024,128], index: 4, kind: input, shape index: {}]   ;;  %s2916_s5 = inlined_call_operand.vmem [shape: f32[1,128], index: 5, kind: input, shape index: {}]   ;;  %s2917_s6 = inlined_call_operand.hbm [shape: bf16[256,256], index: 6, kind: input, shape index: {}]   ;;  %s2918_s7 = inlined_call_operand.vmem [shape: f32[1,256], index: 7, kind: input, shape index: {}]   ;;  %s2919_s8 = inlined_call_operand.hbm [shape: bf16[256,128], index: 8, kind: input, shape index: {}]   ;;  %s2920_s9 = inlined_call_operand.vmem [shape: f32[1,128], index: 9, kind: input, shape index: {}]   ;;  %s2921_s10 = inlined_call_operand.hbm [shape: f32[8,128], index: 10, kind: output, shape index: {}]  }
   0x1   :  { %2933 = sst [smem:[#allocation21_spill]] %s2911_s0 }
   0x2   :  { %2934 = sst [smem:[#allocation22_spill]] %s2912_s1 }
   0x3   :  { %2935 = sst [smem:[#allocation23_spill]] %s2914_s3 }
   0x4   :  { %2936 = sst [smem:[#allocation24_spill]] %s2917_s6 }
   0x5   :  { %2937 = sst [smem:[#allocation25_spill]] %s2921_s10 }
   0x6   :  { %15 = vsyncpa [#allocation4], 0 }
   0x7   :  { %16 = vsyncpa [#allocation7], 0 }
   0x8   :  { %17 = vsyncpa [#allocation10], 0 }
   0x9   :  { %18 = vsyncpa [#allocation5], 0  ;;  %s2559_s13 = smov 0   ;;  %s2561_s14 = smov 0  }
   0xa   :  { %s2563_s15 = smov 0   ;;  %s2565_s16 = smov 0  }
   0xb LB: > { %s2578_s17 = sadd.s32 4294967295, %s2488_s16   ;;  %s2581_s18 = sadd.s32 1, %s2488_s16   ;;  %s2488_s16 = sphi %s2565_s16, %s2965_s16   ;;  %s2484_s15 = sphi %s2563_s15, %s2969_s15   ;;  %s2480_s14 = sphi %s2561_s14, %s2968_s14   ;;  %s2476_s13 = sphi %s2559_s13, %s2967_s13  }
   0xc   : > { %2938 = sst [smem:[#allocation19_spill]] %s2581_s18  ;;  %s154_s19 = ssub.s32 %s2488_s16, %s2581_s18 }
   0xd   : > { %s157_s20 = sadd.s32 1, %s2484_s15  ;;  %p155_p0 = scmp.eq.s32.totalorder %s154_s19, 0 }
   0xe   : > { %p164_p1 = scmp.ne.s32.totalorder %s2484_s15, %s2480_s14  ;;  %p165_p2 = scmp.eq.s32.totalorder %s2488_s16, 0 }
   0xf   : > { %p170_p3 = scmp.ne.s32.totalorder %s2480_s14, %s2476_s13  ;;  %p2922_p5 = scmp.eq.s32.totalorder %s2578_s17, 0 }
  0x10   : > { %s2591_s21 = scalar_select %p155_p0, %s2484_s15, %s157_s20  }
  0x11   : > { %p2593_p4 = por %p165_p2, %p164_p1  ;;  %p1728_p6 = scmp.ge.s32.totalorder %s2488_s16, 1 }
  0x12   : > { %2939 = sst [smem:[#allocation20_spill]] %s2591_s21  ;;  %p275_p7 = scmp.lt.s32.totalorder %s2488_s16, 3 }
  0x13   : > { %p2602_p8 = por %p2922_p5, %p170_p3  ;;  %s2490_s25 = smov [#allocation3]  }
  0x14   : > { %p2607_p10 = pnand %p1728_p6, %p275_p7  ;;  %s288_s26 = sshll.u32 %s2490_s25, 4  ;;  %s289_s26 = int_to_ptr.vmem [resolvable:$true] %s288_s26 }
  0x15   : > { %s2941_s23 = scalar_select %p2602_p8, 1, 0 }
  0x16   : > { %s2942_s24 = scalar_select %p2607_p10, 1, 0 }
  0x17   : > { %p2059_p11 = pneg %p2607_p10  ;;  %p2083_p12 = scmp.lt.s32.totalorder %s2488_s16, 2 }
  0x18   : > { %s2491_s28 = smov [#allocation6]   ;;  %s2945_s0 = sld [smem:[#allocation21_spill]] }
  0x19   : > { %p2616_p13 = pnand %p2059_p11, %p2922_p5  ;;  %s299_s29 = sshll.u32 %s2491_s28, 4  ;;  %s2626_s29 = int_to_ptr.vmem [resolvable:$true] %s299_s29 }
  0x1a   : > { %p2622_p0 = pnand %p2083_p12, %p2593_p4 }
  0x1b   : > { %s2943_s27 = scalar_select %p2616_p13, 1, 0 }
  0x1c   : > { %s2944_s30 = scalar_select %p2622_p0, 1, 0 }
  0x1d   : > { %p2636_p2 = pneg %p2616_p13 }
  0x1e   : > { %s2240_s13 = scalar_lea.hbm %s2945_s0, 64 }
  0x1f   : > { %p2241_p1 = scmp.ne.s32.totalorder %s2945_s0, %s2240_s13  ;;  %p2247_p6 = scmp.lt.u32.totalorder %s2240_s13, %s2945_s0 }
  0x21   : > { %p2243_p3 = pnand %p2636_p2, %p2241_p1 }
  0x23   : > { %p2244_p4 = pneg %p2243_p3 }
  0x25   : > { %p2249_p7 = pnand %p2247_p6, %p2244_p4 }
  0x27   : > { %2252 = shalt.err (!%p2249_p7)
}
  0x28   : > { %s2253_s11 = scalar_lea.vmem %s289_s26, 64  ;;  %p2261_p5 = scmp.lt.s32.totalorder %s289_s26, %s289_s26 }
  0x29   : > { %p2254_p11 = scmp.ne.s32.totalorder %s289_s26, %s2253_s11  ;;  %p2262_p8 = scmp.lt.s32.totalorder %s2253_s11, %s2253_s11 }
  0x2b   : > { %p2256_p12 = pnand %p2254_p11, %p2636_p2  ;;  %p2263_p10 = por %p2262_p8, %p2261_p5 }
  0x2d   : > { %p2257_p9 = pneg %p2256_p12 }
  0x2f   : > { %p2264_p0 = pnand %p2263_p10, %p2257_p9 }
  0x31   : > { %2267 = shalt.err (!%p2264_p0)
}
  0x32   : > { %2062 = dma.hbm_to_vmem [thread:$0]  (!%p2616_p13), %s2945_s0, 64, %s289_s26, [#allocation4]  }
  0x33   : > { %s2947_s1 = sld [smem:[#allocation22_spill]] }
  0x39   : > { %s2268_s22 = scalar_lea.hbm %s2947_s1, 512 }
  0x3a   : > { %p2269_p1 = scmp.ne.s32.totalorder %s2947_s1, %s2268_s22  ;;  %p2275_p8 = scmp.lt.u32.totalorder %s2268_s22, %s2947_s1 }
  0x3c   : > { %p2271_p3 = pnand %p2269_p1, %p2636_p2 }
  0x3e   : > { %p2272_p5 = pneg %p2271_p3 }
  0x40   : > { %p2277_p9 = pnand %p2275_p8, %p2272_p5 }
  0x42   : > { %2280 = shalt.err (!%p2277_p9)
}
  0x43   : > { %s2281_s26 = scalar_lea.vmem %s2626_s29, 512  ;;  %p2289_p6 = scmp.lt.s32.totalorder %s2626_s29, %s2626_s29 }
  0x44   : > { %p2282_p10 = scmp.ne.s32.totalorder %s2626_s29, %s2281_s26  ;;  %p2290_p7 = scmp.lt.s32.totalorder %s2281_s26, %s2281_s26 }
  0x46   : > { %p2284_p0 = pnand %p2282_p10, %p2636_p2  ;;  %p2291_p11 = por %p2290_p7, %p2289_p6 }
  0x48   : > { %p2285_p4 = pneg %p2284_p0 }
  0x4a   : > { %p2292_p12 = pnand %p2291_p11, %p2285_p4 }
  0x4c   : > { %2295 = shalt.err (!%p2292_p12)
}
  0x4d   : > { %2065 = dma.hbm_to_vmem [thread:$0]  (!%p2616_p13), %s2947_s1, 512, %s2626_s29, [#allocation7]  }
  0x4e   : > { %s345_s12 = sand.u32 1, %s2488_s16   ;;  %s2928_s19 = sand.u32 1, %s2484_s15  }
  0x4f   : > { %s1734_s13 = sshll.u32 %s2928_s19, 7  ;;  %s1735_s20 = sshll.u32 %s2488_s16, 6 }
  0x50   : > { %s2948_s6 = sld [smem:[#allocation24_spill]]  ;;  %s349_s26 = scalar_lea.vmem [#allocation11], %s1734_s13 }
  0x51   : > { %s355_s18 = sshll.u32 %s349_s26, 4  ;;  %s2687_s21 = scalar_lea.sflag [#allocation4], %s345_s12  ;;  %s2685_s18 = int_to_ptr.vmem [resolvable:$true] %s355_s18 }
  0x52   : > { %p2949_p3 = scmp.ne.s32.totalorder %s2944_s30, 0 }
  0x54   : > { %p2932_p5 = pneg %p2949_p3 }
  0x56   : > { %s2683_s11 = scalar_lea.hbm %s2948_s6, %s1735_s20  ;;  %s2301_s28 = scalar_lea.hbm %s2948_s6, 4096 }
  0x57   : > { %s2296_s29 = scalar_lea.hbm %s2683_s11, 2048  ;;  %p2302_p10 = scmp.lt.u32.totalorder %s2683_s11, %s2948_s6 }
  0x58   : > { %p2297_p1 = scmp.ne.s32.totalorder %s2683_s11, %s2296_s29  ;;  %p2303_p0 = scmp.lt.u32.totalorder %s2301_s28, %s2296_s29 }
  0x59   : > { %p2305_p6 = scmp.lt.u32.totalorder %s2296_s29, %s2683_s11 }
  0x5a   : > { %p2299_p8 = pnand %p2932_p5, %p2297_p1  ;;  %p2304_p4 = por %p2303_p0, %p2302_p10 }
  0x5c   : > { %p2300_p9 = pneg %p2299_p8  ;;  %p2306_p7 = por %p2305_p6, %p2304_p4 }
  0x5e   : > { %p2307_p11 = pnand %p2306_p7, %p2300_p9 }
  0x60   : > { %2310 = shalt.err (!%p2307_p11)
}
  0x61   : > { %s2311_s12 = scalar_lea.vmem %s2685_s18, 2048  ;;  %s2492_s13 = smov [#allocation11]  }
  0x62   : > { %p2312_p12 = scmp.ne.s32.totalorder %s2685_s18, %s2311_s12  ;;  %s2316_s26 = sshll.u32 %s2492_s13, 4  ;;  %s2317_s26 = int_to_ptr.vmem [resolvable:$false] %s2316_s26 }
  0x63   : > { %s2318_s0 = scalar_lea.vmem %s2317_s26, 4096  ;;  %p2319_p13 = scmp.lt.s32.totalorder %s2685_s18, %s2317_s26 }
  0x64   : > { %p2314_p1 = pnand %p2312_p12, %p2932_p5  ;;  %p2320_p10 = scmp.lt.s32.totalorder %s2318_s0, %s2311_s12 }
  0x66   : > { %p2315_p8 = pneg %p2314_p1  ;;  %p2321_p0 = por %p2320_p10, %p2319_p13 }
  0x68   : > { %p2322_p4 = pnand %p2321_p0, %p2315_p8 }
  0x6a   : > { %2325 = shalt.err (!%p2322_p4)
}
  0x6b   : > { %s2493_s19 = smov 128   ;;  %s2494_s29 = smov 64  }
  0x6c   : > { %s2495_s20 = smov 4   ;;  %s2496_s22 = smov [#allocation8]  }
  0x6d   : > { %2075 = dma.hbm_to_vmem [thread:$0]  (!%p2949_p3), %s2683_s11, 2048, %s2685_s18, %s2687_s21, %s2493_s19, %s2494_s29, %s2495_s20  }
  0x6e   : > { %s309_s28 = sshll.u32 %s2496_s22, 4  ;;  %s2497_s13 = smov [#allocation9]   ;;  %s310_s28 = int_to_ptr.vmem [resolvable:$true] %s309_s28 }
  0x6f   : > { %s325_s26 = sshll.u32 %s2497_s13, 4  ;;  %s2326_s1 = scalar_lea.hbm %s2913_s2, 1024  ;;  %s2717_s26 = int_to_ptr.vmem [resolvable:$true] %s325_s26 }
  0x70   : > { %p2327_p13 = scmp.ne.s32.totalorder %s2913_s2, %s2326_s1  ;;  %p2333_p7 = scmp.lt.u32.totalorder %s2326_s1, %s2913_s2 }
  0x72   : > { %p2329_p9 = pnand %p2327_p13, %p2636_p2 }
  0x74   : > { %p2330_p6 = pneg %p2329_p9 }
  0x76   : > { %p2335_p11 = pnand %p2333_p7, %p2330_p6 }
  0x78   : > { %2338 = shalt.err (!%p2335_p11)
}
  0x79   : > { %s2339_s18 = scalar_lea.vmem %s310_s28, 1024  ;;  %p2347_p10 = scmp.lt.s32.totalorder %s310_s28, %s310_s28 }
  0x7a   : > { %p2340_p12 = scmp.ne.s32.totalorder %s310_s28, %s2339_s18  ;;  %p2348_p0 = scmp.lt.s32.totalorder %s2339_s18, %s2339_s18 }
  0x7c   : > { %p2342_p1 = pnand %p2340_p12, %p2636_p2  ;;  %p2349_p4 = por %p2348_p0, %p2347_p10 }
  0x7e   : > { %p2343_p8 = pneg %p2342_p1 }
  0x80   : > { %p2350_p5 = pnand %p2349_p4, %p2343_p8 }
  0x82   : > { %2353 = shalt.err (!%p2350_p5)
}
  0x83   : > { %p2950_p13 = scmp.ne.s32.totalorder %s2943_s27, 0  ;;  %s2354_s19 = scalar_lea.hbm %s2915_s4, 8192 }
  0x84   : > { %p2355_p9 = scmp.ne.s32.totalorder %s2915_s4, %s2354_s19  ;;  %p2361_p7 = scmp.lt.u32.totalorder %s2354_s19, %s2915_s4 }
  0x85   : > { %2068 = dma.hbm_to_vmem [thread:$0]  (!%p2950_p13), %s2913_s2, 1024, %s310_s28, [#allocation7], %s2494_s29, %s2494_s29, %s2495_s20  }
  0x86   : > { %p2357_p5 = pnand %p2355_p9, %p2636_p2 }
  0x88   : > { %p2358_p6 = pneg %p2357_p5 }
  0x8a   : > { %p2363_p11 = pnand %p2361_p7, %p2358_p6 }
  0x8c   : > { %2366 = shalt.err (!%p2363_p11)
}
  0x8d   : > { %s2367_s28 = scalar_lea.vmem %s2717_s26, 8192  ;;  %p2375_p10 = scmp.lt.s32.totalorder %s2717_s26, %s2717_s26 }
  0x8e   : > { %p2368_p12 = scmp.ne.s32.totalorder %s2717_s26, %s2367_s28  ;;  %p2376_p0 = scmp.lt.s32.totalorder %s2367_s28, %s2367_s28 }
  0x90   : > { %p2370_p1 = pnand %p2368_p12, %p2636_p2  ;;  %p2377_p4 = por %p2376_p0, %p2375_p10 }
  0x92   : > { %p2371_p8 = pneg %p2370_p1 }
  0x94   : > { %p2378_p9 = pnand %p2377_p4, %p2371_p8 }
  0x96   : > { %2381 = shalt.err (!%p2378_p9)
}
  0x97   : > { %2071 = dma.hbm_to_vmem [thread:$0]  (!%p2950_p13), %s2915_s4, 8192, %s2717_s26, [#allocation10], %s2494_s29, %s2494_s29, %s2495_s20  }
  0x98   : > { %s2951_s25 = sand.u32 1, %s2484_s15   ;;  %s1861_s1 = sshll.u32 %s2488_s16, 10 }
  0x99   : > { %s1736_s3 = sshll.u32 %s2951_s25, 6  ;;  %s2772_s19 = scalar_lea.hbm %s2919_s8, %s1861_s1 }
  0x9a   : > { %s375_s27 = scalar_lea.vmem [#allocation12], %s1736_s3  ;;  %s2382_s13 = scalar_lea.hbm %s2772_s19, 1024 }
  0x9b   : > { %s382_s22 = sshll.u32 %s375_s27, 4  ;;  %p2383_p2 = scmp.ne.s32.totalorder %s2772_s19, %s2382_s13  ;;  %s2774_s22 = int_to_ptr.vmem [resolvable:$true] %s382_s22 }
  0x9c   : > { %p2952_p13 = pneg %p2949_p3  ;;  %s2387_s12 = scalar_lea.hbm %s2919_s8, 2048 }
  0x9d   : > { %p2388_p7 = scmp.lt.u32.totalorder %s2772_s19, %s2919_s8  ;;  %p2389_p11 = scmp.lt.u32.totalorder %s2387_s12, %s2382_s13 }
  0x9e   : > { %p2385_p5 = pnand %p2383_p2, %p2952_p13  ;;  %p2391_p1 = scmp.lt.u32.totalorder %s2382_s13, %s2772_s19 }
  0x9f   : > { %p2390_p12 = por %p2389_p11, %p2388_p7 }
  0xa0   : > { %p2386_p6 = pneg %p2385_p5 }
  0xa1   : > { %p2392_p8 = por %p2391_p1, %p2390_p12 }
  0xa3   : > { %p2393_p10 = pnand %p2392_p8, %p2386_p6 }
  0xa5   : > { %2396 = shalt.err (!%p2393_p10)
}
  0xa6   : > { %s2397_s11 = scalar_lea.vmem %s2774_s22, 1024  ;;  %p2953_p4 = pmov %p2952_p13 }
  0xa7   : > { %p2398_p0 = scmp.ne.s32.totalorder %s2774_s22, %s2397_s11  ;;  %s2498_s18 = smov [#allocation12]  }
  0xa8   : > { %s2402_s25 = sshll.u32 %s2498_s18, 4  ;;  %s2403_s25 = int_to_ptr.vmem [resolvable:$false] %s2402_s25 }
  0xa9   : > { %p2400_p9 = pnand %p2398_p0, %p2953_p4  ;;  %s2404_s3 = scalar_lea.vmem %s2403_s25, 2048 }
  0xaa   : > { %p2405_p13 = scmp.lt.s32.totalorder %s2774_s22, %s2403_s25  ;;  %p2406_p5 = scmp.lt.s32.totalorder %s2404_s3, %s2397_s11 }
  0xab   : > { %p2401_p2 = pneg %p2400_p9 }
  0xac   : > { %p2407_p7 = por %p2406_p5, %p2405_p13 }
  0xae   : > { %p2408_p11 = pnand %p2407_p7, %p2401_p2 }
  0xb0   : > { %2411 = shalt.err (!%p2408_p11)
}
  0xb1   : > { %2078 = dma.hbm_to_vmem [thread:$0]  (!%p2949_p3), %s2772_s19, 1024, %s2774_s22, %s2687_s21, %s2494_s29, %s2494_s29, %s2495_s20  }
  0xb2   : > { %p2954_p6 = scmp.ne.s32.totalorder %s2942_s24, 0 }
  0xb3   : > { %p2955_p12 = scmp.eq.s32.totalorder (!%p2954_p6), %s2578_s17, 0 }
  0xb4   : > { %394 = sbr.rel (%p2954_p6) target bundleno = 1011 (0x3f3), region = 60 }
  0xbb   : > { %2455 = dma.done.wait (%p2955_p12), [#allocation4], 64   ;;  %p2956_p1 = pmov %p2955_p12 }
  0xbd   : > { %2457 = vsyncadd (%p2956_p1), [#allocation4], 4294967232  ;;  %p2957_p8 = pmov %p2956_p1 }
  0xbe   : > { %p2958_p10 = pmov %p2956_p1 }
  0xbf   : > { %2459 = dma.done.wait (%p2957_p8), [#allocation7], 1536  }
  0xc0   : > { %2461 = vsyncadd (%p2958_p10), [#allocation7], 4294965760  ;;  %p2959_p0 = pmov %p2956_p1 }
  0xc2   : > { %2463 = dma.done.wait (%p2959_p0), [#allocation10], 8192   ;;  %p2960_p3 = pmov %p2959_p0 }
  0xc3   : > { %s412_s24 = sand.u32 1, %s2578_s17   ;;  %s414_s30 = sand.u32 1, %s2480_s14  }
  0xc4   : > { %2465 = vsyncadd (%p2960_p3), [#allocation10], 4294959104  ;;  %s1744_s21 = sshll.u32 %s414_s30, 7  ;;  %s413_s29 = scalar_lea.sflag [#allocation4], %s412_s24 }
  0xc5   : > { %s2819_s20 = scalar_lea.vmem [#allocation11], %s1744_s21  ;;  %p2961_p4 = scmp.ne.s32.totalorder %s2941_s23, 0 }
  0xc7   : > { %2467 = dma.done.wait (%p2961_p4), %s413_s29, 3072  }
  0xc8   : > { %2469 = vsyncadd (%p2961_p4), %s413_s29, 4294964224  ;;  %s1745_s1 = sshll.u32 %s414_s30, 6  ;;  %p465_p9 = scmp.lt.s32.totalorder %s2578_s17, 1 }
  0xc9   : > { %s2833_s22 = scalar_lea.vmem [#allocation12], %s1745_s1  ;;  %p2962_p2 = scmp.ne.s32.totalorder %s2578_s17, 0 }
  0xca   : > { %s2827_s6 = scalar_select %p465_p9, %s2578_s17, 1 }
  0xcb   : > { %473 = sbr.rel (%p2962_p2) target bundleno = 522 (0x20a), region = 88  ;;  %v2134_v0 = vld [vmem:[#allocation8] sm:$0xff] (!%p2962_p2)   ;;  %v2499_v1 = vmov (!%p2962_p2), 0.0   ;;  %vm2500_vm0 = vmmov (!%p2962_p2), 0   ;;  %v2137_v4 = vld [vmem:[#allocation8 + $0x8] sm:$0xff] (!%p2962_p2)   ;;  %v2140_v7 = vld [vmem:[#allocation8 + $0x10] sm:$0xff] (!%p2962_p2)  }
  0xcc   : > { %s467_s27 = scalar_lea.vmem %s2918_s7, %s2827_s6  ;;  %1995 = vmatprep.subr.bf16.mxu0 (!%p2962_p2), %v2499_v1  ;;  %v2135_v2 = vld [vmem:[#allocation9 + $0x40] sm:$0xff] (!%p2962_p2)   ;;  %2011 = vmatprep.mubr.msk.bf16.mxu0 (!%p2962_p2), %vm2500_vm0, %v2499_v1  ;;  %v2138_v5 = vld [vmem:[#allocation9 + $0x48] sm:$0xff] (!%p2962_p2)   ;;  %v2141_v8 = vld [vmem:[#allocation9 + $0x50] sm:$0xff] (!%p2962_p2)   ;;  %s2963_s28 = sld [smem:[#allocation23_spill]] (!%p2962_p2) }
  0xcd   : > { %1996 = vmatpush3.bf16.msra.mxu0 (!%p2962_p2), %v2134_v0  ;;  %v2136_v3 = vld [vmem:[#allocation9] sm:$0xff] (!%p2962_p2)   ;;  %1876 = vmatprep.subr.bf16.mxu1 (!%p2962_p2), %v2135_v2  ;;  %v2139_v6 = vld [vmem:[#allocation9 + $0x8] sm:$0xff] (!%p2962_p2)   ;;  %v2142_v9 = vld [vmem:[#allocation9 + $0x10] sm:$0xff] (!%p2962_p2)  }
  0xce   : > { %1997 = vmatprep.subr.bf16.mxu0 (!%p2962_p2), %v2499_v1  ;;  %1877 = vmatpush3.bf16.msra.mxu1 (!%p2962_p2), %v2136_v3  ;;  %v2143_v10 = vld [vmem:[#allocation8 + $0x18] sm:$0xff] (!%p2962_p2)   ;;  %v2147_v13 = vld [vmem:[#allocation9 + $0x60] sm:$0xff] (!%p2962_p2)   ;;  %v2150_v16 = vld [vmem:[#allocation9 + $0x68] sm:$0xff] (!%p2962_p2)  }
  0xcf   : > { %1878 = vmatprep.subr.bf16.mxu1 (!%p2962_p2), %v2138_v5  ;;  %v2144_v11 = vld [vmem:[#allocation9 + $0x58] sm:$0xff] (!%p2962_p2)   ;;  %v2146_v14 = vld [vmem:[#allocation8 + $0x20] sm:$0xff] (!%p2962_p2)   ;;  %v2149_v17 = vld [vmem:[#allocation8 + $0x28] sm:$0xff] (!%p2962_p2)  }
  0xd0   : > { %v2145_v12 = vld [vmem:[#allocation9 + $0x18] sm:$0xff] (!%p2962_p2)   ;;  %v2148_v15 = vld [vmem:[#allocation9 + $0x20] sm:$0xff] (!%p2962_p2)   ;;  %v2151_v18 = vld [vmem:[#allocation9 + $0x28] sm:$0xff] (!%p2962_p2)  }
  0xd1   : > { %1998 = vmatpush3.bf16.msra.mxu0 (!%p2962_p2), %v2137_v4  ;;  %v2153_v19 = vld [vmem:[#allocation9 + $0x70] sm:$0xff] (!%p2962_p2)   ;;  %v2155_v22 = vld [vmem:[#allocation8 + $0x38] sm:$0xff] (!%p2962_p2)   ;;  %v586_v25 = vld [vmem:[#allocation6] sm:$0xff] (!%p2962_p2) }
  0xd2   : > { %1999 = vmatprep.subr.bf16.mxu0 %v2499_v1  ;;  %1879 = vmatpush3.bf16.msra.mxu1 %v2139_v6  ;;  %v2152_v20 = vld [vmem:[#allocation8 + $0x30] sm:$0xff]   ;;  %v2156_v23 = vld [vmem:[#allocation9 + $0x78] sm:$0xff]   ;;  %v2158_v26 = vld [vmem:[#allocation9 + $0xc0] sm:$0xff]   ;;  %v1758_v27 = vcombine.high %v586_v25, %v586_v25  ;;  %v1757_v32 = vcombine.low %v586_v25, %v586_v25 }
  0xd3   : > { %1880 = vmatprep.subr.bf16.mxu1 %v2141_v8  ;;  %v2154_v21 = vld [vmem:[#allocation9 + $0x30] sm:$0xff]   ;;  %v2157_v24 = vld [vmem:[#allocation9 + $0x38] sm:$0xff]   ;;  %v2159_v29 = vld [vmem:[#allocation9 + $0x80] sm:$0xff]  }
  0xd4   : > { %v474_v28 = vld [vmem:[#allocation3] sm:$0xf]  ;;  %1169 = vmatprep.mubr.bf16.mxu1 %v1758_v27  ;;  %v2162_v30 = vld [vmem:[#allocation9 + $0x140] sm:$0xff]   ;;  %v2164_v33 = vld [vmem:[#allocation9 + $0xc8] sm:$0xff]  }
  0xd5   : > { %2000 = vmatpush3.bf16.msra.mxu0 %v2140_v7  ;;  %v2163_v31 = vld [vmem:[#allocation9 + $0x100] sm:$0xff]   ;;  %v2165_v34 = vld [vmem:[#allocation9 + $0x88] sm:$0xff]   ;;  %v2168_v37 = vld [vmem:[#allocation9 + $0xd0] sm:$0xff]  }
  0xd6   : > { %2001 = vmatprep.subr.bf16.mxu0 %v2499_v1  ;;  %1881 = vmatpush3.bf16.msra.mxu1 %v2142_v9  ;;  %v2166_v35 = vld [vmem:[#allocation9 + $0x148] sm:$0xff]   ;;  %v2169_v38 = vld [vmem:[#allocation9 + $0x90] sm:$0xff]   ;;  %v2172_v41 = vld [vmem:[#allocation9 + $0xd8] sm:$0xff]  }
  0xd7   : > { %1882 = vmatprep.subr.bf16.mxu1 %v2144_v11  ;;  %v2167_v36 = vld [vmem:[#allocation9 + $0x108] sm:$0xff]   ;;  %v2170_v39 = vld [vmem:[#allocation9 + $0x150] sm:$0xff]   ;;  %v2173_v42 = vld [vmem:[#allocation9 + $0x98] sm:$0xff]  }
  0xd8   : > { %v2171_v40 = vld [vmem:[#allocation9 + $0x110] sm:$0xff]   ;;  %v2174_v43 = vld [vmem:[#allocation9 + $0x158] sm:$0xff]   ;;  %v2176_v45 = vld [vmem:[#allocation9 + $0xe0] sm:$0xff]  }
  0xd9   : > { %2002 = vmatpush3.bf16.msra.mxu0 %v2143_v10  ;;  %v2175_v44 = vld [vmem:[#allocation9 + $0x118] sm:$0xff]   ;;  %v2177_v46 = vld [vmem:[#allocation9 + $0xa0] sm:$0xff]   ;;  %v2180_v49 = vld [vmem:[#allocation9 + $0xe8] sm:$0xff]  }
  0xda   : > { %2003 = vmatprep.subr.bf16.mxu0 %v2499_v1  ;;  %1883 = vmatpush3.bf16.msra.mxu1 %v2145_v12  ;;  %v2178_v47 = vld [vmem:[#allocation9 + $0x160] sm:$0xff]   ;;  %v2181_v50 = vld [vmem:[#allocation9 + $0xa8] sm:$0xff]   ;;  %v2184_v53 = vld [vmem:[#allocation9 + $0xf0] sm:$0xff]  }
  0xdb   : > { %1884 = vmatprep.subr.bf16.mxu1 %v2147_v13  ;;  %v2179_v48 = vld [vmem:[#allocation9 + $0x120] sm:$0xff]   ;;  %v2182_v51 = vld [vmem:[#allocation9 + $0x168] sm:$0xff]   ;;  %v2185_v54 = vld [vmem:[#allocation9 + $0xb0] sm:$0xff]  }
  0xdc   : > { %v2183_v52 = vld [vmem:[#allocation9 + $0x128] sm:$0xff]   ;;  %v2186_v55 = vld [vmem:[#allocation9 + $0x170] sm:$0xff]   ;;  %v2188_v57 = vld [vmem:[#allocation9 + $0xf8] sm:$0xff]  }
  0xdd   : > { %2004 = vmatpush3.bf16.msra.mxu0 %v2146_v14  ;;  %v2187_v56 = vld [vmem:[#allocation9 + $0x130] sm:$0xff]   ;;  %v587_v58 = vld [vmem:[#allocation6 + $0x8] sm:$0xff]  ;;  %v2189_v59 = vld [vmem:[#allocation9 + $0xb8] sm:$0xff]  }
  0xde   : > { %2005 = vmatprep.subr.bf16.mxu0 %v2499_v1  ;;  %1885 = vmatpush3.bf16.msra.mxu1 %v2148_v15  ;;  %v1760_v60 = vcombine.high %v587_v58, %v587_v58  ;;  %v2190_v61 = vld [vmem:[#allocation9 + $0x178] sm:$0xff]   ;;  %v588_v62 = vld [vmem:[#allocation6 + $0x10] sm:$0xff]  ;;  %v2194_v63 = vld [vmem:[#allocation9 + $0x1c0] sm:$0xff]   ;;  %v1759_v2 = vcombine.low %v587_v58, %v587_v58 }
  0xdf   : > { %1886 = vmatprep.subr.bf16.mxu1 %v2150_v16  ;;  %v1762_v0 = vcombine.high %v588_v62, %v588_v62  ;;  %v2197_v3 = vld [vmem:[#allocation9 + $0x180] sm:$0xff]   ;;  %v1761_v4 = vcombine.low %v588_v62, %v588_v62  ;;  %v2198_v5 = vld [vmem:[#allocation9 + $0x1c8] sm:$0xff]   ;;  %v2200_v7 = vld [vmem:[#allocation9 + $0x1d0] sm:$0xff]  }
  0xe0   : > { %v2199_v6 = vld [vmem:[#allocation9 + $0x188] sm:$0xff]   ;;  %v2201_v8 = vld [vmem:[#allocation9 + $0x190] sm:$0xff]   ;;  %v2202_v9 = vld [vmem:[#allocation9 + $0x1d8] sm:$0xff]  }
  0xe1   : > { %2006 = vmatpush3.bf16.msra.mxu0 %v2149_v17  ;;  %v589_v10 = vld [vmem:[#allocation6 + $0x18] sm:$0xff]  ;;  %v2204_v13 = vld [vmem:[#allocation9 + $0x1e0] sm:$0xff]   ;;  %v2206_v15 = vld [vmem:[#allocation9 + $0x1e8] sm:$0xff]  }
  0xe2   : > { %2007 = vmatprep.subr.bf16.mxu0 %v2499_v1  ;;  %1887 = vmatpush3.bf16.msra.mxu1 %v2151_v18  ;;  %v2203_v11 = vld [vmem:[#allocation9 + $0x198] sm:$0xff]   ;;  %v1764_v12 = vcombine.high %v589_v10, %v589_v10  ;;  %v2205_v14 = vld [vmem:[#allocation9 + $0x1a0] sm:$0xff]   ;;  %v2207_v16 = vld [vmem:[#allocation9 + $0x1a8] sm:$0xff]  }
  0xe3   : > { %1888 = vmatprep.subr.bf16.mxu1 %v2153_v19  ;;  %v2208_v17 = vld [vmem:[#allocation9 + $0x1f0] sm:$0xff]   ;;  %v2210_v19 = vld [vmem:[#allocation9 + $0x1f8] sm:$0xff]  }
  0xe4   : > { %v2209_v18 = vld [vmem:[#allocation9 + $0x1b0] sm:$0xff]  }
  0xe5   : > { %2008 = vmatpush3.bf16.msra.mxu0 %v2152_v20  ;;  %v2211_v20 = vld [vmem:[#allocation9 + $0x1b8] sm:$0xff]  }
  0xe6   : > { %2009 = vmatprep.subr.bf16.mxu0 %v2499_v1  ;;  %1889 = vmatpush3.bf16.msra.mxu1 %v2154_v21  ;;  %v2193_v1 = vld [vmem:[#allocation9 + $0x138] sm:$0xff]   ;;  %v1763_v21 = vcombine.low %v589_v10, %v589_v10 }
  0xe7   : > { %1890 = vmatprep.subr.bf16.mxu1 %v2156_v23 }
  0xe9   : > { %2010 = vmatpush3.bf16.msra.mxu0 %v2155_v22  ;;  %v1829_v22 = vld [vmem:[%s2920_s9] ss:$0 sm:$0xff] }
  0xea   : > { %1898 = vmatprep.subr.bf16.mxu0 %v2158_v26  ;;  %1891 = vmatpush3.bf16.msra.mxu1 %v2157_v24  ;;  %1310 = vst [vmem:[#allocation13] sm:$0xff] %v1829_v22 }
  0xeb   : > { %1920 = vmatprep.subr.bf16.mxu1 %v2162_v30 }
  0xec   : > { %2012 = vmatmul.mubr.bf16.vlgmr.msra.gmra.mrb[0].mxu0 %v474_v28 }
  0xed   : > { %1899 = vmatpush3.bf16.msra.mxu0 %v2159_v29  ;;  %1170 = vmatmul.mubr.bf16.vlgmr.msra.gmra.mrb[0].mxu1 %v1757_v32  ;;  %v1756_v32 = vld [vmem:[%s2916_s5] ss:$0 sm:$0xff] }
  0xee   : > { %1900 = vmatprep.subr.bf16.mxu0 %v2164_v33  ;;  %1921 = vmatpush3.bf16.msra.mxu1 %v2163_v31 }
  0xef   : > { %1922 = vmatprep.subr.bf16.mxu1 %v2166_v35  ;;  %1209 = vmatprep.mubr.bf16.mxu0 %v1760_v60 }
  0xf0   : > { %1249 = vmatprep.mubr.bf16.mxu1 %v1762_v0 }
  0xf1   : > { %1901 = vmatpush3.bf16.msra.mxu0 %v2165_v34 }
  0xf2   : > { %1902 = vmatprep.subr.bf16.mxu0 %v2168_v37  ;;  %1923 = vmatpush3.bf16.msra.mxu1 %v2167_v36 }
  0xf3   : > { %1924 = vmatprep.subr.bf16.mxu1 %v2170_v39 }
  0xf5   : > { %1903 = vmatpush3.bf16.msra.mxu0 %v2169_v38 }
  0xf6   : > { %1904 = vmatprep.subr.bf16.mxu0 %v2172_v41  ;;  %1925 = vmatpush3.bf16.msra.mxu1 %v2171_v40 }
  0xf7   : > { %1926 = vmatprep.subr.bf16.mxu1 %v2174_v43 }
  0xf9   : > { %1905 = vmatpush3.bf16.msra.mxu0 %v2173_v42 }
  0xfa   : > { %1906 = vmatprep.subr.bf16.mxu0 %v2176_v45  ;;  %1927 = vmatpush3.bf16.msra.mxu1 %v2175_v44 }
  0xfb   : > { %1928 = vmatprep.subr.bf16.mxu1 %v2178_v47 }
  0xfd   : > { %1907 = vmatpush3.bf16.msra.mxu0 %v2177_v46  ;;  %v1747_v46 = vld [vmem:[%s2963_s28] ss:$0 sm:$0xff] }
  0xfe   : > { %1908 = vmatprep.subr.bf16.mxu0 %v2180_v49  ;;  %1929 = vmatpush3.bf16.msra.mxu1 %v2179_v48 }
  0xff   : > { %1930 = vmatprep.subr.bf16.mxu1 %v2182_v51 }
 0x101   : > { %1909 = vmatpush3.bf16.msra.mxu0 %v2181_v50 }
 0x102   : > { %1910 = vmatprep.subr.bf16.mxu0 %v2184_v53  ;;  %1931 = vmatpush3.bf16.msra.mxu1 %v2183_v52 }
 0x103   : > { %1932 = vmatprep.subr.bf16.mxu1 %v2186_v55 }
 0x105   : > { %1911 = vmatpush3.bf16.msra.mxu0 %v2185_v54 }
 0x106   : > { %1912 = vmatprep.subr.bf16.mxu0 %v2188_v57  ;;  %1933 = vmatpush3.bf16.msra.mxu1 %v2187_v56 }
 0x107   : > { %1934 = vmatprep.subr.bf16.mxu1 %v2190_v61 }
 0x109   : > { %1913 = vmatpush3.bf16.msra.mxu0 %v2189_v59 }
 0x10a   : > { %1942 = vmatprep.subr.bf16.mxu0 %v2194_v63  ;;  %1935 = vmatpush3.bf16.msra.mxu1 %v2193_v1 }
 0x10c   : > { %1210 = vmatmul.mubr.bf16.vlgmr.msra.gmra.mrb[4].mxu0 %v1759_v2 }
 0x10d   : > { %1943 = vmatpush3.bf16.msra.mxu0 %v2197_v3  ;;  %1250 = vmatmul.mubr.bf16.vlgmr.msra.gmra.mrb[4].mxu1 %v1761_v4 }
 0x10e   : > { %1944 = vmatprep.subr.bf16.mxu0 %v2198_v5  ;;  %1289 = vmatprep.mubr.bf16.mxu0 %v1764_v12 }
 0x111   : > { %1945 = vmatpush3.bf16.msra.mxu0 %v2199_v6 }
 0x112   : > { %1946 = vmatprep.subr.bf16.mxu0 %v2200_v7 }
 0x115   : > { %1947 = vmatpush3.bf16.msra.mxu0 %v2201_v8 }
 0x116   : > { %1948 = vmatprep.subr.bf16.mxu0 %v2202_v9 }
 0x119   : > { %1949 = vmatpush3.bf16.msra.mxu0 %v2203_v11 }
 0x11a   : > { %1950 = vmatprep.subr.bf16.mxu0 %v2204_v13 }
 0x11d   : > { %1951 = vmatpush3.bf16.msra.mxu0 %v2205_v14 }
 0x11e   : > { %1952 = vmatprep.subr.bf16.mxu0 %v2206_v15 }
 0x121   : > { %1953 = vmatpush3.bf16.msra.mxu0 %v2207_v16 }
 0x122   : > { %1954 = vmatprep.subr.bf16.mxu0 %v2208_v17 }
 0x125   : > { %1955 = vmatpush3.bf16.msra.mxu0 %v2209_v18 }
 0x126   : > { %1956 = vmatprep.subr.bf16.mxu0 %v2210_v19 }
 0x129   : > { %1957 = vmatpush3.bf16.msra.mxu0 %v2211_v20 }
 0x12c   : > { %1290 = vmatmul.mubr.bf16.vlgmr.msra.gmra.mrb[8].mxu0 %v1763_v21 }
 0x1bf   : > { %v580_v23 = vpop.f32.mrb[0].mxu0 }
 0x1c0   : > { %v2013_v24 = vpop.f32.mrb[1].mxu0  ;;  %v1892_v26 = vpop.f32.mrb[0].mxu1  ;;  %v581_v49 = vadd.f32 %v1747_v46, %v580_v23 }
 0x1c1   : > { %v583_v25 = vpop.f32.mrb[2].mxu0  ;;  %v1893_v28 = vpop.f32.mrb[1].mxu1 }
 0x1c2   : > { %v2014_v27 = vpop.f32.mrb[3].mxu0  ;;  %v1894_v29 = vadd.f32 %v1893_v28, %v1892_v26  ;;  %v1895_v30 = vpop.f32.mrb[2].mxu1  ;;  %v1297_v54 = vmax.f32 %v581_v49, 0.0 }
 0x1c3   : > { %v1896_v31 = vpop.f32.mrb[3].mxu1 }
 0x1c4   : > { %v1172_v33 = vadd.f32 %v1894_v29, %v1756_v32 }
 0x1df   : > { %v1914_v34 = vpop.f32.mrb[4].mxu0 }
 0x1e0   : > { %v1915_v35 = vpop.f32.mrb[5].mxu0  ;;  %v1936_v38 = vpop.f32.mrb[4].mxu1 }
 0x1e1   : > { %v1916_v36 = vadd.f32 %v1915_v35, %v1914_v34  ;;  %v1917_v37 = vpop.f32.mrb[6].mxu0  ;;  %v1937_v40 = vpop.f32.mrb[5].mxu1 }
 0x1e2   : > { %v1918_v39 = vpop.f32.mrb[7].mxu0  ;;  %v1938_v42 = vadd.f32 %v1937_v40, %v1936_v38  ;;  %v1939_v43 = vpop.f32.mrb[6].mxu1 }
 0x1e3   : > { %v1212_v41 = vadd.f32 %v1916_v36, %v1172_v33  ;;  %v1940_v44 = vpop.f32.mrb[7].mxu1 }
 0x1e5   : > { %v1252_v45 = vadd.f32 %v1938_v42, %v1212_v41 }
 0x1ff   : > { %v1958_v47 = vpop.f32.mrb[8].mxu0 }
 0x200   : > { %v1959_v48 = vpop.f32.mrb[9].mxu0 }
 0x201   : > { %v1960_v50 = vadd.f32 %v1959_v48, %v1958_v47  ;;  %v1961_v51 = vpop.f32.mrb[10].mxu0 }
 0x202   : > { %v1962_v52 = vpop.f32.mrb[11].mxu0 }
 0x203   : > { %v1292_v53 = vadd.f32 %v1960_v50, %v1252_v45 }
 0x205   : > { %v1300_v55 = vmax.f32 %v1292_v53, 0.0 }
 0x207   : > { %v1865_v56 = vpack.c.bf16 %v1300_v55, %v1297_v54 }
 0x209   : > { %1866 = vst [vmem:[#allocation2] sm:$0xff] %v1865_v56  }
 0x20a PF: > { %v2214_v57 = vld [vmem:[%s2819_s20 + $0x40] sm:$0xff]   ;;  %v2501_v59 = vmov 0.0   ;;  %v2216_v60 = vld [vmem:[%s2819_s20 + $0x48] sm:$0xff]   ;;  %v2218_v62 = vld [vmem:[%s2819_s20 + $0x50] sm:$0xff]   ;;  %vm2502_vm1 = vmmov 0   ;;  %s2503_s25 = smov [#allocation13]  }
 0x20b   : > { %v2215_v58 = vld [vmem:[%s2819_s20] sm:$0xff]   ;;  %2015 = vmatprep.subr.bf16.mxu1 %v2501_v59  ;;  %1964 = vmatprep.subr.bf16.mxu0 %v2214_v57  ;;  %v2217_v61 = vld [vmem:[%s2819_s20 + $0x8] sm:$0xff]   ;;  %v2219_v63 = vld [vmem:[%s2819_s20 + $0x10] sm:$0xff]   ;;  %s1610_s3 = sshll.u32 %s2503_s25, 4  ;;  %p2088_p13 = scmp.eq.s32.totalorder %s2578_s17, 1  ;;  %s1611_s3 = int_to_ptr.vmem [resolvable:$true] %s1610_s3 }
 0x20c   : > { %1965 = vmatpush3.bf16.msra.mxu0 %v2215_v58  ;;  %v2220_v0 = vld [vmem:[%s2819_s20 + $0x58] sm:$0xff]   ;;  %v2222_v2 = vld [vmem:[%s2819_s20 + $0x60] sm:$0xff]   ;;  %v2224_v4 = vld [vmem:[%s2819_s20 + $0x68] sm:$0xff]   ;;  %2031 = vmatprep.mubr.msk.bf16.mxu1 %vm2502_vm1, %v2501_v59  ;;  %s2412_s24 = scalar_lea.vmem %s1611_s3, 128  ;;  %p2419_p6 = scmp.lt.s32.totalorder %s1611_s3, %s1611_s3 }
 0x20d   : > { %1966 = vmatprep.subr.bf16.mxu0 %v2216_v60  ;;  %v2221_v1 = vld [vmem:[%s2819_s20 + $0x18] sm:$0xff]   ;;  %v2223_v3 = vld [vmem:[%s2819_s20 + $0x20] sm:$0xff]   ;;  %v2225_v8 = vld [vmem:[%s2819_s20 + $0x28] sm:$0xff]   ;;  %p2413_p5 = scmp.ne.s32.totalorder %s1611_s3, %s2412_s24  ;;  %p2420_p12 = scmp.lt.s32.totalorder %s2412_s24, %s2412_s24 }
 0x20e   : > { %v2232_v7 = vld [vmem:[%s2833_s22] sm:$0xff]   ;;  %v2226_v9 = vld [vmem:[%s2819_s20 + $0x70] sm:$0xff]   ;;  %v2233_v10 = vld [vmem:[%s2833_s22 + $0x8] sm:$0xff]  }
 0x20f   : > { %2016 = vmatpush3.bf16.msra.mxu1 %v2232_v7  ;;  %v2227_v11 = vld [vmem:[%s2819_s20 + $0x30] sm:$0xff]   ;;  %v2228_v12 = vld [vmem:[%s2819_s20 + $0x78] sm:$0xff]   ;;  %v2236_v17 = vld [vmem:[%s2833_s22 + $0x20] sm:$0xff]   ;;  %p2414_p7 = pnand %p2413_p5, %p2088_p13  ;;  %p2421_p1 = por %p2420_p12, %p2419_p6 }
 0x210   : > { %1967 = vmatpush3.bf16.msra.mxu0 %v2217_v61  ;;  %v1311_v5 = vld [vmem:[#allocation2] sm:$0xff]  ;;  %2017 = vmatprep.subr.bf16.mxu1 %v2501_v59  ;;  %v2237_v18 = vld [vmem:[%s2833_s22 + $0x28] sm:$0xff]   ;;  %v1495_v30 = vld [vmem:[#allocation13] sm:$0xff] }
 0x211   : > { %1968 = vmatprep.subr.bf16.mxu0 %v2218_v62  ;;  %v1832_v6 = vcombine.high %v1311_v5, %v1311_v5  ;;  %v2234_v13 = vld [vmem:[%s2833_s22 + $0x10] sm:$0xff]   ;;  %v2229_v14 = vld [vmem:[%s2819_s20 + $0x38] sm:$0xff]   ;;  %v1831_v16 = vcombine.low %v1311_v5, %v1311_v5  ;;  %p2415_p11 = pneg %p2414_p7 }
 0x212   : > { %v2235_v15 = vld [vmem:[%s2833_s22 + $0x18] sm:$0xff]   ;;  %v2238_v19 = vld [vmem:[%s2833_s22 + $0x30] sm:$0xff]  }
 0x213   : > { %1486 = vmatprep.mubr.bf16.mxu0 %v1832_v6  ;;  %2018 = vmatpush3.bf16.msra.mxu1 %v2233_v10  ;;  %v2239_v20 = vld [vmem:[%s2833_s22 + $0x38] sm:$0xff]   ;;  %v1830_v22 = vld [vmem:[%s467_s27] ss:$0 sm:$0xff]  ;;  %p2422_p8 = pnand %p2421_p1, %p2415_p11 }
 0x214   : > { %1969 = vmatpush3.bf16.msra.mxu0 %v2219_v63  ;;  %2019 = vmatprep.subr.bf16.mxu1 %v2501_v59 }
 0x215   : > { %1970 = vmatprep.subr.bf16.mxu0 %v2220_v0 }
 0x217   : > { %2020 = vmatpush3.bf16.msra.mxu1 %v2234_v13 }
 0x218   : > { %1971 = vmatpush3.bf16.msra.mxu0 %v2221_v1  ;;  %2021 = vmatprep.subr.bf16.mxu1 %v2501_v59 }
 0x219   : > { %1972 = vmatprep.subr.bf16.mxu0 %v2222_v2 }
 0x21b   : > { %2022 = vmatpush3.bf16.msra.mxu1 %v2235_v15 }
 0x21c   : > { %1973 = vmatpush3.bf16.msra.mxu0 %v2223_v3  ;;  %2023 = vmatprep.subr.bf16.mxu1 %v2501_v59 }
 0x21d   : > { %1974 = vmatprep.subr.bf16.mxu0 %v2224_v4 }
 0x21f   : > { %2024 = vmatpush3.bf16.msra.mxu1 %v2236_v17 }
 0x220   : > { %1975 = vmatpush3.bf16.msra.mxu0 %v2225_v8  ;;  %2025 = vmatprep.subr.bf16.mxu1 %v2501_v59 }
 0x221   : > { %1976 = vmatprep.subr.bf16.mxu0 %v2226_v9 }
 0x223   : > { %2026 = vmatpush3.bf16.msra.mxu1 %v2237_v18 }
 0x224   : > { %1977 = vmatpush3.bf16.msra.mxu0 %v2227_v11  ;;  %2027 = vmatprep.subr.bf16.mxu1 %v2501_v59 }
 0x225   : > { %1978 = vmatprep.subr.bf16.mxu0 %v2228_v12 }
 0x227   : > { %2028 = vmatpush3.bf16.msra.mxu1 %v2238_v19 }
 0x228   : > { %1979 = vmatpush3.bf16.msra.mxu0 %v2229_v14  ;;  %2029 = vmatprep.subr.bf16.mxu1 %v2501_v59 }
 0x22b   : > { %1487 = vmatmul.mubr.bf16.vlgmr.msra.gmra.mrb[0].mxu0 %v1831_v16  ;;  %2030 = vmatpush3.bf16.msra.mxu1 %v2239_v20 }
 0x2fe   : > { %v1980_v21 = vpop.f32.mrb[0].mxu0 }
 0x2ff   : > { %v1981_v23 = vpop.f32.mrb[1].mxu0 }
 0x300   : > { %v1982_v24 = vadd.f32 %v1981_v23, %v1980_v21  ;;  %v1983_v25 = vpop.f32.mrb[2].mxu0 }
 0x301   : > { %v1984_v26 = vpop.f32.mrb[3].mxu0 }
 0x302   : > { %v1489_v27 = vadd.f32 %v1982_v24, %v1830_v22 }
 0x304   : > { %v1494_v28 = vmax.f32 %v1489_v27, 0.0 }
 0x306   : > { %v1496_v29 = vpack.c.bf16 %v1494_v28, %v1494_v28 }
 0x308   : > { %2032 = vmatmul.mubr.bf16.vlgmr.msra.gmra.mrb[0].mxu1 %v1496_v29 }
 0x3db   : > { %v1595_v31 = vpop.f32.mrb[0].mxu1 }
 0x3dc   : > { %v1601_v32 = vadd.f32 %v1595_v31, %v1495_v30  ;;  %v2033_v33 = vpop.f32.mrb[1].mxu1 }
 0x3dd   : > { %v1598_v34 = vpop.f32.mrb[2].mxu1 }
 0x3de   : > { %1602 = vst [vmem:[#allocation13] sm:$0xff] %v1601_v32  ;;  %v2034_v35 = vpop.f32.mrb[3].mxu1 }
 0x3df   : > { %2425 = shalt.err (!%p2422_p8)
}
 0x3e0   : > { %s2964_s29 = sld [smem:[#allocation25_spill]] }
 0x3e6   : > { %s2426_s20 = scalar_lea.hbm %s2964_s29, 128 }
 0x3e7   : > { %p2427_p10 = scmp.ne.s32.totalorder %s2964_s29, %s2426_s20  ;;  %p2432_p4 = scmp.lt.u32.totalorder %s2426_s20, %s2964_s29 }
 0x3e9   : > { %p2428_p0 = pnand %p2427_p10, %p2088_p13 }
 0x3eb   : > { %p2429_p3 = pneg %p2428_p0 }
 0x3ed   : > { %p2434_p9 = pnand %p2432_p4, %p2429_p3 }
 0x3ef   : > { %2437 = shalt.err (!%p2434_p9)
}
 0x3f0   : > { %2056 = dma.vmem_to_hbm [thread:$0]  (%p2088_p13), %s1611_s3, 128, %s2964_s29, [#allocation5]  }
 0x3f1   : > { %2471 = dma.done.wait (%p2088_p13), [#allocation5], 128  }
 0x3f2   : > { %2473 = vsyncadd (%p2088_p13), [#allocation5], 4294967168 }
 0x3f3 PF: > { %s2965_s16 = sld [smem:[#allocation19_spill]]  ;;  %s2966_s23 = sld [smem:[#allocation20_spill]] }
 0x3f4   : > { %s2967_s13 = smov %s2480_s14  ;;  %s2968_s14 = smov %s2484_s15 }
 0x3f9   : > { %p21_p2 = scmp.ge.s32.totalorder %s2965_s16, 4   ;;  %s2969_s15 = smov %s2966_s23 }
 0x3fb   :  { %23 = sbr.rel (!%p21_p2) target bundleno = 11 (0xb), region = 130 }
 0x402   :  { %1623 = vsyncpa [#allocation4], 1 }
 0x403   :  { %1625 = vsyncpa [#allocation4 + $0x1], 1 }
 0x404   :  { %1626 = vsyncpa [#allocation7], 1 }
 0x405   :  { %1627 = vsyncpa [#allocation10], 1 }
 0x406   :  { %1628 = vsyncpa [#allocation5], 1 }
 0x407   :  { %1630 = vsyncpa [#allocation5 + $0x1], 1 }

</bundles_post_ra>
